<compile_context>
chip_gen: v5e
topology: v5e:2x2
jax: 0.10.0
libtpu: 0.0.40
codegen_flags: <defaults>
</compile_context>

<pallas_src>
import functools

import jax
import jax.numpy as jnp
from jax import lax
from jax.experimental import pallas as pl
from jax.experimental.pallas import tpu as pltpu


# ---------------------------------------------------------------------------
# Shared: one (Cout, l_tile) conv tile as a single MXU contraction over K*Cin.
# ---------------------------------------------------------------------------
def _conv_tile(xc_ref, xh_ref, w_ref, xcol_ref, *, n_taps, cin_p, l_tile):
    # xc_ref   : (1, cin_p, l_tile)   current input tile          (bf16)
    # xh_ref   : (1, cin_p, 128)      128-lane halo block         (bf16)
    # w_ref    : (Cout, K*cin_p)      weights, tap-major rows     (bf16)
    # xcol_ref : (K*cin_p, l_tile)    persistent VMEM im2col scratch (bf16)
    win = jnp.concatenate([xc_ref[0], xh_ref[0]], axis=1)   # (cin_p, l_tile+128)
    # Tap k occupies sublane rows [k*cin_p, (k+1)*cin_p) of the scratch.
    # cin_p is a multiple of the bf16 sublane pack (16), so every tap store is
    # tile-aligned (no sublane relayout); the lane slice needs at most K-1<=128
    # lanes of shift.
    for k in range(n_taps):
        xcol_ref[k * cin_p:(k + 1) * cin_p, :] = win[:, k:k + l_tile]
    # bf16 operands, f32 accumulation on the MXU.
    return jnp.dot(w_ref[...], xcol_ref[...],
                   preferred_element_type=jnp.float32)      # (Cout, l_tile)


# ---------------------------------------------------------------------------
# Pass 1: conv tile -> per-tile per-channel masked [sum, sumsq] statistics.
# ---------------------------------------------------------------------------
def _conv_stats_kernel(xc_ref, xh_ref, w_ref, st_ref, xcol_ref, *,
                       n_taps, cin_p, l_tile, l_out):
    y = _conv_tile(xc_ref, xh_ref, w_ref, xcol_ref,
                   n_taps=n_taps, cin_p=cin_p, l_tile=l_tile)
    # Mask the padded tail columns of the last tile out of the statistics.
    lane = lax.broadcasted_iota(jnp.int32, (1, l_tile), 1)
    valid = (pl.program_id(1) * l_tile + lane) < l_out
    ym = jnp.where(valid, y, 0.0)
    st_ref[0, 0, :, 0:1] = jnp.sum(ym, axis=1, keepdims=True)        # sum
    st_ref[0, 0, :, 1:2] = jnp.sum(ym * ym, axis=1, keepdims=True)   # sumsq


# ---------------------------------------------------------------------------
# Pass 2: recompute conv tile, apply fused per-channel scale/shift + tanh.
# ---------------------------------------------------------------------------
def _conv_bn_tanh_kernel(xc_ref, xh_ref, w_ref, p_ref, o_ref, xcol_ref, *,
                         n_taps, cin_p, l_tile):
    y = _conv_tile(xc_ref, xh_ref, w_ref, xcol_ref,
                   n_taps=n_taps, cin_p=cin_p, l_tile=l_tile)
    p = p_ref[...]                                   # (Cout, 2) [scale, shift]
    o_ref[0] = jnp.tanh(y * p[:, 0:1] + p[:, 1:2]).astype(o_ref.dtype)


def _vmem_budget():
    """(vmem_limit_bytes, default l_tile): conservative on v7x (64 MiB VMEM),
    roomier on 128-MiB-VMEM parts (v5e / v6e)."""
    try:
        cap = int(getattr(pltpu.get_tpu_info(), "vmem_capacity_bytes", 0))
    except Exception:
        cap = 0
    if cap >= 100 * 1024 * 1024:           # v5e / v6e: 128 MiB physical VMEM
        return 96 * 1024 * 1024, 1024
    return 32 * 1024 * 1024, 512           # v7x-safe default


def conv_tanh_block(x, weight, bias, gamma, beta, *, padding, eps=1e-5,
                    l_tile=None):
    """x: (B, Cin, L) f32 -> (B, Cout, L_out) f32 (Conv1d + BN(train) + tanh)."""
    B, Cin, L = x.shape
    Cout, Cin_w, K = weight.shape
    assert Cin == Cin_w
    assert K - 1 <= 128, "halo is a single 128-lane block"
    L_out = L + 2 * padding - K + 1
    assert L_out > 0

    vmem_limit, default_tile = _vmem_budget()
    if l_tile is None:
        l_tile = default_tile
    # Lane-dense tile (multiple of 128), capped by the rounded output length.
    l_tile = max(128, min(l_tile, pl.cdiv(L_out, 128) * 128))
    n_l = pl.cdiv(L_out, l_tile)
    # v7x megacore: make sure the fully parallel (B, n_l) grid has >= 2 blocks.
    if B * n_l < 2 and L_out > 128:
        l_tile = max(128, pl.cdiv(pl.cdiv(L_out, 2), 128) * 128)
        n_l = pl.cdiv(L_out, l_tile)
    halo_blocks = l_tile // 128
    # Pad the input length by one extra 128-lane block so the halo read of the
    # last L-tile (block index n_l*halo_blocks) stays in bounds.
    lp = n_l * l_tile + 128
    cin_p = ((Cin + 15) // 16) * 16        # bf16 sublane pack alignment

    # Conv bias dropped: per-channel bias + training-mode BatchNorm is exactly
    # a no-op on the output (mean subtraction cancels it; variance is shift
    # invariant).
    del bias

    # Glue (layout plumbing only): zero-pad channels/length, fold the K taps
    # into the weight contraction dim (tap-major, matching the im2col rows),
    # bf16 matmul operands.
    x_pad = jnp.pad(x, ((0, 0), (0, cin_p - Cin), (padding, lp - L - padding)))
    x_pad = x_pad.astype(jnp.bfloat16)
    w2 = jnp.pad(weight, ((0, 0), (0, cin_p - Cin), (0, 0)))
    w2 = jnp.transpose(w2, (0, 2, 1)).reshape(Cout, K * cin_p)
    w2 = w2.astype(jnp.bfloat16)

    cparams = pltpu.CompilerParams(
        dimension_semantics=("parallel", "parallel"),
        vmem_limit_bytes=vmem_limit)

    grid = (B, n_l)
    x_cur_spec = pl.BlockSpec((1, cin_p, l_tile), lambda b, l: (b, 0, l))
    x_halo_spec = pl.BlockSpec((1, cin_p, 128),
                               lambda b, l: (b, 0, (l + 1) * halo_blocks))
    scratch = [pltpu.VMEM((K * cin_p, l_tile), jnp.bfloat16)]

    def run(const_spec_kwargs):
        # Constant-block operands (weights, fused scale/shift): single buffer.
        w_spec = pl.BlockSpec((Cout, K * cin_p), lambda b, l: (0, 0),
                              **const_spec_kwargs)

        stats = pl.pallas_call(
            functools.partial(_conv_stats_kernel, n_taps=K, cin_p=cin_p,
                              l_tile=l_tile, l_out=L_out),
            grid=grid,
            in_specs=[x_cur_spec, x_halo_spec, w_spec],
            out_specs=pl.BlockSpec((1, 1, Cout, 2), lambda b, l: (b, l, 0, 0)),
            out_shape=jax.ShapeDtypeStruct((B, n_l, Cout, 2), jnp.float32),
            scratch_shapes=scratch,
            compiler_params=cparams,
        )(x_pad, x_pad, w2)

        # Tiny per-channel reduction: training-mode BN statistics (biased
        # variance) folded into a single per-channel scale/shift.
        # TODO(synk): E[x^2]-E[x]^2 in f32 can cancel when |mean| >> std; a
        # shifted / two-pass variance would be more robust at extreme scale.
        sums = jnp.sum(stats, axis=(0, 1))                 # (Cout, 2)
        cnt = jnp.float32(B * L_out)
        mean = sums[:, 0] / cnt
        var = jnp.maximum(sums[:, 1] / cnt - mean * mean, 0.0)
        scale = gamma.astype(jnp.float32) * lax.rsqrt(var + eps)
        shift = beta.astype(jnp.float32) - mean * scale
        p2 = jnp.stack([scale, shift], axis=1)             # (Cout, 2)

        p_spec = pl.BlockSpec((Cout, 2), lambda b, l: (0, 0),
                              **const_spec_kwargs)
        return pl.pallas_call(
            functools.partial(_conv_bn_tanh_kernel, n_taps=K, cin_p=cin_p,
                              l_tile=l_tile),
            grid=grid,
            in_specs=[x_cur_spec, x_halo_spec, w_spec, p_spec],
            out_specs=pl.BlockSpec((1, Cout, l_tile), lambda b, l: (b, 0, l)),
            out_shape=jax.ShapeDtypeStruct((B, Cout, L_out), jnp.float32),
            scratch_shapes=scratch,
            compiler_params=cparams,
        )(x_pad, x_pad, w2, p2)

    # TODO(synk): BatchNorm1d running_mean/running_var buffer updates are a
    # training side effect and are not part of the forward output.
    try:
        return run({"pipeline_mode": pl.Buffered(1)})
    except Exception:
        # Fallback for Pallas versions without BlockSpec pipeline_mode support.
        return run({})


def _reference(x, weight, bias, gamma, beta, *, padding, eps=1e-5):
    # Independent plain-JAX f32 reference (Conv1d + training-mode BN + tanh).
    conv = lax.conv_general_dilated(
        x, weight, window_strides=(1,), padding=((padding, padding),),
        dimension_numbers=("NCH", "OIH", "NCH"))
    conv = conv + bias.reshape(1, -1, 1)
    mean = jnp.mean(conv, axis=(0, 2), keepdims=True)
    var = jnp.mean((conv - mean) ** 2, axis=(0, 2), keepdims=True)
    xhat = (conv - mean) * lax.rsqrt(var + eps)
    return jnp.tanh(xhat * gamma.reshape(1, -1, 1) + beta.reshape(1, -1, 1))


if __name__ == "__main__":
    # Small shapes consistent with Conv1d forward: x is (B, C_in, L).
    B, C_in, C_out, L, K, PAD = 2, 4, 8, 16, 5, 2

    key = jax.random.PRNGKey(0)
    kx, kw, kb = jax.random.split(key, 3)

    x = jax.random.normal(kx, (B, C_in, L), dtype=jnp.float32)

    # Deterministic parameter init (shapes from nn.Conv1d / nn.BatchNorm1d).
    fan_in = C_in * K
    bound = 1.0 / jnp.sqrt(jnp.float32(fan_in))
    weight = jax.random.uniform(kw, (C_out, C_in, K), jnp.float32, -bound, bound)
    bias = jax.random.uniform(kb, (C_out,), jnp.float32, -bound, bound)
    gamma = jnp.ones((C_out,), jnp.float32)   # BatchNorm1d default weight
    beta = jnp.zeros((C_out,), jnp.float32)   # BatchNorm1d default bias

    out = conv_tanh_block(x, weight, bias, gamma, beta, padding=PAD)
    out = jax.block_until_ready(out)

    ref = _reference(x, weight, bias, gamma, beta, padding=PAD)
    assert out.shape == ref.shape == (B, C_out, L + 2 * PAD - K + 1)
    # Loose tolerance: kernel uses bf16 matmul operands (f32 accumulation);
    # the reference is full f32.
    assert jnp.allclose(out, ref, atol=5e-2, rtol=5e-2), "mismatch vs reference"

    print("KERNEL_OK")
</pallas_src>

<mosaic_0001>
module attributes {stable_mosaic.version = 11 : i64} {
  func.func @_conv_stats_kernel(%arg0: i32, %arg1: i32, %arg2: memref<1x16x128xbf16, #tpu.memory_space<vmem>>, %arg3: memref<1x16x128xbf16, #tpu.memory_space<vmem>>, %arg4: memref<8x80xbf16, #tpu.memory_space<vmem>>, %arg5: memref<1x1x8x2xf32, #tpu.memory_space<vmem>>, %arg6: memref<80x128xbf16, #tpu.memory_space<vmem>>) attributes {dimension_semantics = [#tpu.dimension_semantics<parallel>, #tpu.dimension_semantics<parallel>], iteration_bounds = array<i64: 2, 1>, scalar_prefetch = 0 : i64, scratch_operands = 1 : i64, tpu.core_type = #tpu.core_type<tc>, window_params = [{transform_indices = @transform_0, window_bounds = array<i64: 1, 16, 128>}, {transform_indices = @transform_1, window_bounds = array<i64: 1, 16, 128>}, {pipeline_mode = #tpu.pipeline_mode<synchronous>, transform_indices = @transform_2, window_bounds = array<i64: 8, 80>}, {transform_indices = @transform_3, window_bounds = array<i64: 1, 1, 8, 2>}]} {
    %c0 = arith.constant 0 : index
    %c0_0 = arith.constant 0 : index
    %c0_1 = arith.constant 0 : index
    %0 = vector.load %arg2[%c0, %c0_0, %c0_1] : memref<1x16x128xbf16, #tpu.memory_space<vmem>>, vector<1x16x128xbf16>
    %1 = vector.shape_cast %0 : vector<1x16x128xbf16> to vector<16x128xbf16>
    %c0_2 = arith.constant 0 : index
    %c0_3 = arith.constant 0 : index
    %c0_4 = arith.constant 0 : index
    %2 = vector.load %arg3[%c0_2, %c0_3, %c0_4] : memref<1x16x128xbf16, #tpu.memory_space<vmem>>, vector<1x16x128xbf16>
    %3 = vector.shape_cast %2 : vector<1x16x128xbf16> to vector<16x128xbf16>
    %4 = tpu.concatenate %1, %3 in 1 : vector<16x128xbf16>, vector<16x128xbf16> -> vector<16x256xbf16>
    %5 = vector.extract_strided_slice %4 {offsets = [0, 0], sizes = [16, 128], strides = [1, 1]} : vector<16x256xbf16> to vector<16x128xbf16>
    %c0_5 = arith.constant 0 : index
    %c0_6 = arith.constant 0 : index
    %6 = vector.load %arg6[%c0_5, %c0_6] : memref<80x128xbf16, #tpu.memory_space<vmem>>, vector<16x128xbf16>
    tpu.vector_store %arg6[%c0_5, %c0_6], %5 {strides = array<i32>} : memref<80x128xbf16, #tpu.memory_space<vmem>>, vector<16x128xbf16>,
    %7 = vector.extract_strided_slice %4 {offsets = [0, 1], sizes = [16, 128], strides = [1, 1]} : vector<16x256xbf16> to vector<16x128xbf16>
    %c16 = arith.constant 16 : index
    %c0_7 = arith.constant 0 : index
    %8 = vector.load %arg6[%c16, %c0_7] : memref<80x128xbf16, #tpu.memory_space<vmem>>, vector<16x128xbf16>
    tpu.vector_store %arg6[%c16, %c0_7], %7 {strides = array<i32>} : memref<80x128xbf16, #tpu.memory_space<vmem>>, vector<16x128xbf16>,
    %9 = vector.extract_strided_slice %4 {offsets = [0, 2], sizes = [16, 128], strides = [1, 1]} : vector<16x256xbf16> to vector<16x128xbf16>
    %c32 = arith.constant 32 : index
    %c0_8 = arith.constant 0 : index
    %10 = vector.load %arg6[%c32, %c0_8] : memref<80x128xbf16, #tpu.memory_space<vmem>>, vector<16x128xbf16>
    tpu.vector_store %arg6[%c32, %c0_8], %9 {strides = array<i32>} : memref<80x128xbf16, #tpu.memory_space<vmem>>, vector<16x128xbf16>,
    %11 = vector.extract_strided_slice %4 {offsets = [0, 3], sizes = [16, 128], strides = [1, 1]} : vector<16x256xbf16> to vector<16x128xbf16>
    %c48 = arith.constant 48 : index
    %c0_9 = arith.constant 0 : index
    %12 = vector.load %arg6[%c48, %c0_9] : memref<80x128xbf16, #tpu.memory_space<vmem>>, vector<16x128xbf16>
    tpu.vector_store %arg6[%c48, %c0_9], %11 {strides = array<i32>} : memref<80x128xbf16, #tpu.memory_space<vmem>>, vector<16x128xbf16>,
    %13 = vector.extract_strided_slice %4 {offsets = [0, 4], sizes = [16, 128], strides = [1, 1]} : vector<16x256xbf16> to vector<16x128xbf16>
    %c64 = arith.constant 64 : index
    %c0_10 = arith.constant 0 : index
    %14 = vector.load %arg6[%c64, %c0_10] : memref<80x128xbf16, #tpu.memory_space<vmem>>, vector<16x128xbf16>
    tpu.vector_store %arg6[%c64, %c0_10], %13 {strides = array<i32>} : memref<80x128xbf16, #tpu.memory_space<vmem>>, vector<16x128xbf16>,
    %c0_11 = arith.constant 0 : index
    %c0_12 = arith.constant 0 : index
    %15 = vector.load %arg4[%c0_11, %c0_12] : memref<8x80xbf16, #tpu.memory_space<vmem>>, vector<8x80xbf16>
    %c0_13 = arith.constant 0 : index
    %c0_14 = arith.constant 0 : index
    %16 = vector.load %arg6[%c0_13, %c0_14] : memref<80x128xbf16, #tpu.memory_space<vmem>>, vector<80x128xbf16>
    %cst = arith.constant dense<0.000000e+00> : vector<8x128xf32>
    %17 = tpu.matmul %15, %16, %cst {dimension_numbers = #tpu.dot_dimension_numbers<[1], [0], [0], [1], [0, 0, 1, 1], [], []>} : vector<8x80xbf16>, vector<80x128xbf16>, vector<8x128xf32> -> vector<8x128xf32>
    %18 = tpu.iota {dimensions = array<i32: 1>} : vector<1x128xi32>
    %c128_i32 = arith.constant 128 : i32
    %19 = arith.muli %arg1, %c128_i32 : i32
    %20 = vector.broadcast %19 : i32 to vector<1x128xi32>
    %21 = arith.addi %20, %18 : vector<1x128xi32>
    %c16_i32 = arith.constant 16 : i32
    %22 = vector.broadcast %c16_i32 : i32 to vector<1x128xi32>
    %23 = arith.cmpi slt, %21, %22 : vector<1x128xi32>
    %cst_15 = arith.constant 0.000000e+00 : f32
    %24 = vector.shape_cast %23 : vector<1x128xi1> to vector<1x128xi1>
    %25 = vector.broadcast %24 : vector<1x128xi1> to vector<8x128xi1>
    %26 = vector.broadcast %cst_15 : f32 to vector<8x128xf32>
    %27 = arith.select %25, %17, %26 : vector<8x128xi1>, vector<8x128xf32>
    %cst_16 = arith.constant dense<0.000000e+00> : vector<8xf32>
    %28 = vector.multi_reduction <add>, %27, %cst_16 [1] : vector<8x128xf32> to vector<8xf32>
    %29 = vector.shape_cast %28 : vector<8xf32> to vector<8x1xf32>
    %c0_17 = arith.constant 0 : index
    %c0_18 = arith.constant 0 : index
    %c0_19 = arith.constant 0 : index
    %c0_20 = arith.constant 0 : index
    %30 = vector.load %arg5[%c0_17, %c0_18, %c0_19, %c0_20] : memref<1x1x8x2xf32, #tpu.memory_space<vmem>>, vector<1x1x8x1xf32>
    %31 = vector.shape_cast %30 : vector<1x1x8x1xf32> to vector<8x1xf32>
    %32 = vector.shape_cast %29 : vector<8x1xf32> to vector<1x1x8x1xf32>
    tpu.vector_store %arg5[%c0_17, %c0_18, %c0_19, %c0_20], %32 {strides = array<i32>} : memref<1x1x8x2xf32, #tpu.memory_space<vmem>>, vector<1x1x8x1xf32>,
    %33 = arith.mulf %27, %27 : vector<8x128xf32>
    %cst_21 = arith.constant dense<0.000000e+00> : vector<8xf32>
    %34 = vector.multi_reduction <add>, %33, %cst_21 [1] : vector<8x128xf32> to vector<8xf32>
    %35 = vector.shape_cast %34 : vector<8xf32> to vector<8x1xf32>
    %c0_22 = arith.constant 0 : index
    %c0_23 = arith.constant 0 : index
    %c0_24 = arith.constant 0 : index
    %c1 = arith.constant 1 : index
    %36 = vector.load %arg5[%c0_22, %c0_23, %c0_24, %c1] : memref<1x1x8x2xf32, #tpu.memory_space<vmem>>, vector<1x1x8x1xf32>
    %37 = vector.shape_cast %36 : vector<1x1x8x1xf32> to vector<8x1xf32>
    %38 = vector.shape_cast %35 : vector<8x1xf32> to vector<1x1x8x1xf32>
    tpu.vector_store %arg5[%c0_22, %c0_23, %c0_24, %c1], %38 {strides = array<i32>} : memref<1x1x8x2xf32, #tpu.memory_space<vmem>>, vector<1x1x8x1xf32>,
    return
  }
  func.func @transform_0(%arg0: i32, %arg1: i32) -> (i32, i32, i32) {
    %c0_i32 = arith.constant 0 : i32
    %c0_i32_0 = arith.constant 0 : i32
    return %arg0, %c0_i32, %arg1 : i32, i32, i32
  }
  func.func @transform_1(%arg0: i32, %arg1: i32) -> (i32, i32, i32) {
    %c1_i32 = arith.constant 1 : i32
    %0 = arith.addi %arg1, %c1_i32 : i32
    %c1_i32_0 = arith.constant 1 : i32
    %1 = arith.muli %0, %c1_i32_0 : i32
    %c0_i32 = arith.constant 0 : i32
    %c0_i32_1 = arith.constant 0 : i32
    return %arg0, %c0_i32, %1 : i32, i32, i32
  }
  func.func @transform_2(%arg0: i32, %arg1: i32) -> (i32, i32) {
    %c0_i32 = arith.constant 0 : i32
    %c0_i32_0 = arith.constant 0 : i32
    %c0_i32_1 = arith.constant 0 : i32
    return %c0_i32, %c0_i32_0 : i32, i32
  }
  func.func @transform_3(%arg0: i32, %arg1: i32) -> (i32, i32, i32, i32) {
    %c0_i32 = arith.constant 0 : i32
    %c0_i32_0 = arith.constant 0 : i32
    %c0_i32_1 = arith.constant 0 : i32
    return %arg0, %arg1, %c0_i32, %c0_i32_0 : i32, i32, i32, i32
  }
}

module attributes {stable_mosaic.version = 11 : i64} {
  func.func @_conv_stats_kernel(%arg0: i32, %arg1: i32, %arg2: memref<1x16x128xbf16, #tpu.memory_space<vmem>>, %arg3: memref<1x16x128xbf16, #tpu.memory_space<vmem>>, %arg4: memref<8x80xbf16, #tpu.memory_space<vmem>>, %arg5: memref<1x1x8x2xf32, #tpu.memory_space<vmem>>, %arg6: memref<80x128xbf16, #tpu.memory_space<vmem>>) attributes {dimension_semantics = [#tpu.dimension_semantics<parallel>, #tpu.dimension_semantics<parallel>], iteration_bounds = array<i64: 2, 1>, scalar_prefetch = 0 : i64, scratch_operands = 1 : i64, tpu.core_type = #tpu.core_type<tc>, window_params = [{transform_indices = @transform_0, window_bounds = array<i64: 1, 16, 128>}, {transform_indices = @transform_1, window_bounds = array<i64: 1, 16, 128>}, {pipeline_mode = #tpu.pipeline_mode<synchronous>, transform_indices = @transform_2, window_bounds = array<i64: 8, 80>}, {transform_indices = @transform_3, window_bounds = array<i64: 1, 1, 8, 2>}]} {
    %c0 = arith.constant 0 : index
    %c0_0 = arith.constant 0 : index
    %c0_1 = arith.constant 0 : index
    %0 = vector.load %arg2[%c0, %c0_0, %c0_1] : memref<1x16x128xbf16, #tpu.memory_space<vmem>>, vector<1x16x128xbf16>
    %1 = vector.shape_cast %0 : vector<1x16x128xbf16> to vector<16x128xbf16>
    %c0_2 = arith.constant 0 : index
    %c0_3 = arith.constant 0 : index
    %c0_4 = arith.constant 0 : index
    %2 = vector.load %arg3[%c0_2, %c0_3, %c0_4] : memref<1x16x128xbf16, #tpu.memory_space<vmem>>, vector<1x16x128xbf16>
    %3 = vector.shape_cast %2 : vector<1x16x128xbf16> to vector<16x128xbf16>
    %4 = tpu.concatenate %1, %3 in 1 : vector<16x128xbf16>, vector<16x128xbf16> -> vector<16x256xbf16>
    %5 = vector.extract_strided_slice %4 {offsets = [0, 0], sizes = [16, 128], strides = [1, 1]} : vector<16x256xbf16> to vector<16x128xbf16>
    %c0_5 = arith.constant 0 : index
    %c0_6 = arith.constant 0 : index
    %6 = vector.load %arg6[%c0_5, %c0_6] : memref<80x128xbf16, #tpu.memory_space<vmem>>, vector<16x128xbf16>
    tpu.vector_store %arg6[%c0_5, %c0_6], %5 {strides = array<i32>} : memref<80x128xbf16, #tpu.memory_space<vmem>>, vector<16x128xbf16>,
    %7 = vector.extract_strided_slice %4 {offsets = [0, 1], sizes = [16, 128], strides = [1, 1]} : vector<16x256xbf16> to vector<16x128xbf16>
    %c16 = arith.constant 16 : index
    %c0_7 = arith.constant 0 : index
    %8 = vector.load %arg6[%c16, %c0_7] : memref<80x128xbf16, #tpu.memory_space<vmem>>, vector<16x128xbf16>
    tpu.vector_store %arg6[%c16, %c0_7], %7 {strides = array<i32>} : memref<80x128xbf16, #tpu.memory_space<vmem>>, vector<16x128xbf16>,
    %9 = vector.extract_strided_slice %4 {offsets = [0, 2], sizes = [16, 128], strides = [1, 1]} : vector<16x256xbf16> to vector<16x128xbf16>
    %c32 = arith.constant 32 : index
    %c0_8 = arith.constant 0 : index
    %10 = vector.load %arg6[%c32, %c0_8] : memref<80x128xbf16, #tpu.memory_space<vmem>>, vector<16x128xbf16>
    tpu.vector_store %arg6[%c32, %c0_8], %9 {strides = array<i32>} : memref<80x128xbf16, #tpu.memory_space<vmem>>, vector<16x128xbf16>,
    %11 = vector.extract_strided_slice %4 {offsets = [0, 3], sizes = [16, 128], strides = [1, 1]} : vector<16x256xbf16> to vector<16x128xbf16>
    %c48 = arith.constant 48 : index
    %c0_9 = arith.constant 0 : index
    %12 = vector.load %arg6[%c48, %c0_9] : memref<80x128xbf16, #tpu.memory_space<vmem>>, vector<16x128xbf16>
    tpu.vector_store %arg6[%c48, %c0_9], %11 {strides = array<i32>} : memref<80x128xbf16, #tpu.memory_space<vmem>>, vector<16x128xbf16>,
    %13 = vector.extract_strided_slice %4 {offsets = [0, 4], sizes = [16, 128], strides = [1, 1]} : vector<16x256xbf16> to vector<16x128xbf16>
    %c64 = arith.constant 64 : index
    %c0_10 = arith.constant 0 : index
    %14 = vector.load %arg6[%c64, %c0_10] : memref<80x128xbf16, #tpu.memory_space<vmem>>, vector<16x128xbf16>
    tpu.vector_store %arg6[%c64, %c0_10], %13 {strides = array<i32>} : memref<80x128xbf16, #tpu.memory_space<vmem>>, vector<16x128xbf16>,
    %c0_11 = arith.constant 0 : index
    %c0_12 = arith.constant 0 : index
    %15 = vector.load %arg4[%c0_11, %c0_12] : memref<8x80xbf16, #tpu.memory_space<vmem>>, vector<8x80xbf16>
    %c0_13 = arith.constant 0 : index
    %c0_14 = arith.constant 0 : index
    %16 = vector.load %arg6[%c0_13, %c0_14] : memref<80x128xbf16, #tpu.memory_space<vmem>>, vector<80x128xbf16>
    %cst = arith.constant dense<0.000000e+00> : vector<8x128xf32>
    %17 = tpu.matmul %15, %16, %cst {dimension_numbers = #tpu.dot_dimension_numbers<[1], [0], [0], [1], [0, 0, 1, 1], [], []>} : vector<8x80xbf16>, vector<80x128xbf16>, vector<8x128xf32> -> vector<8x128xf32>
    %18 = tpu.iota {dimensions = array<i32: 1>} : vector<1x128xi32>
    %c128_i32 = arith.constant 128 : i32
    %19 = arith.muli %arg1, %c128_i32 : i32
    %20 = vector.broadcast %19 : i32 to vector<1x128xi32>
    %21 = arith.addi %20, %18 : vector<1x128xi32>
    %c16_i32 = arith.constant 16 : i32
    %22 = vector.broadcast %c16_i32 : i32 to vector<1x128xi32>
    %23 = arith.cmpi slt, %21, %22 : vector<1x128xi32>
    %cst_15 = arith.constant 0.000000e+00 : f32
    %24 = vector.shape_cast %23 : vector<1x128xi1> to vector<1x128xi1>
    %25 = vector.broadcast %24 : vector<1x128xi1> to vector<8x128xi1>
    %26 = vector.broadcast %cst_15 : f32 to vector<8x128xf32>
    %27 = arith.select %25, %17, %26 : vector<8x128xi1>, vector<8x128xf32>
    %cst_16 = arith.constant dense<0.000000e+00> : vector<8xf32>
    %28 = vector.multi_reduction <add>, %27, %cst_16 [1] : vector<8x128xf32> to vector<8xf32>
    %29 = vector.shape_cast %28 : vector<8xf32> to vector<8x1xf32>
    %c0_17 = arith.constant 0 : index
    %c0_18 = arith.constant 0 : index
    %c0_19 = arith.constant 0 : index
    %c0_20 = arith.constant 0 : index
    %30 = vector.load %arg5[%c0_17, %c0_18, %c0_19, %c0_20] : memref<1x1x8x2xf32, #tpu.memory_space<vmem>>, vector<1x1x8x1xf32>
    %31 = vector.shape_cast %30 : vector<1x1x8x1xf32> to vector<8x1xf32>
    %32 = vector.shape_cast %29 : vector<8x1xf32> to vector<1x1x8x1xf32>
    tpu.vector_store %arg5[%c0_17, %c0_18, %c0_19, %c0_20], %32 {strides = array<i32>} : memref<1x1x8x2xf32, #tpu.memory_space<vmem>>, vector<1x1x8x1xf32>,
    %33 = arith.mulf %27, %27 : vector<8x128xf32>
    %cst_21 = arith.constant dense<0.000000e+00> : vector<8xf32>
    %34 = vector.multi_reduction <add>, %33, %cst_21 [1] : vector<8x128xf32> to vector<8xf32>
    %35 = vector.shape_cast %34 : vector<8xf32> to vector<8x1xf32>
    %c0_22 = arith.constant 0 : index
    %c0_23 = arith.constant 0 : index
    %c0_24 = arith.constant 0 : index
    %c1 = arith.constant 1 : index
    %36 = vector.load %arg5[%c0_22, %c0_23, %c0_24, %c1] : memref<1x1x8x2xf32, #tpu.memory_space<vmem>>, vector<1x1x8x1xf32>
    %37 = vector.shape_cast %36 : vector<1x1x8x1xf32> to vector<8x1xf32>
    %38 = vector.shape_cast %35 : vector<8x1xf32> to vector<1x1x8x1xf32>
    tpu.vector_store %arg5[%c0_22, %c0_23, %c0_24, %c1], %38 {strides = array<i32>} : memref<1x1x8x2xf32, #tpu.memory_space<vmem>>, vector<1x1x8x1xf32>,
    return
  }
  func.func @transform_0(%arg0: i32, %arg1: i32) -> (i32, i32, i32) {
    %c0_i32 = arith.constant 0 : i32
    %c0_i32_0 = arith.constant 0 : i32
    return %arg0, %c0_i32, %arg1 : i32, i32, i32
  }
  func.func @transform_1(%arg0: i32, %arg1: i32) -> (i32, i32, i32) {
    %c1_i32 = arith.constant 1 : i32
    %0 = arith.addi %arg1, %c1_i32 : i32
    %c1_i32_0 = arith.constant 1 : i32
    %1 = arith.muli %0, %c1_i32_0 : i32
    %c0_i32 = arith.constant 0 : i32
    %c0_i32_1 = arith.constant 0 : i32
    return %arg0, %c0_i32, %1 : i32, i32, i32
  }
  func.func @transform_2(%arg0: i32, %arg1: i32) -> (i32, i32) {
    %c0_i32 = arith.constant 0 : i32
    %c0_i32_0 = arith.constant 0 : i32
    %c0_i32_1 = arith.constant 0 : i32
    return %c0_i32, %c0_i32_0 : i32, i32
  }
  func.func @transform_3(%arg0: i32, %arg1: i32) -> (i32, i32, i32, i32) {
    %c0_i32 = arith.constant 0 : i32
    %c0_i32_0 = arith.constant 0 : i32
    %c0_i32_1 = arith.constant 0 : i32
    return %arg0, %arg1, %c0_i32, %c0_i32_0 : i32, i32, i32, i32
  }
}

</mosaic_0001>

<bundles_post_ra>
// kernel: tpu_custom_call.1
= control target key start
LH: loop header
LB: loop body
LE: loop exit
PB: predicated region body
PF: predicated region fallthrough
CT: control target
= control target key end

     0   :  { %s989_s0 = inlined_call_operand.hbm [shape: bf16[2,16,256], index: 0, kind: input, shape index: {}]   ;;  %s990_s1 = inlined_call_operand.hbm [shape: bf16[2,16,256], index: 1, kind: input, shape index: {}]   ;;  %s991_s2 = inlined_call_operand.hbm [shape: bf16[8,80], index: 2, kind: input, shape index: {}]   ;;  %s992_s3 = inlined_call_operand.vmem [shape: f32[2,1,8,2], index: 3, kind: output, shape index: {}]  }
   0x1   :  { %994 = sst [smem:[#allocation11_spill]] %s989_s0 }
   0x2   :  { %995 = sst [smem:[#allocation12_spill]] %s991_s2 }
   0x3   :  { %8 = vsyncpa [#allocation4], 0 }
   0x4   :  { %10 = vsyncpa [#allocation4 + $0x1], 0 }
   0x5   :  { %11 = vsyncpa [#allocation6], 0 }
   0x6   :  { %13 = vsyncpa [#allocation6 + $0x1], 0  ;;  %s856_s12 = smov 0   ;;  %s858_s13 = smov 0  }
   0x7   :  { %s860_s14 = smov 0   ;;  %s862_s15 = smov 0  }
   0x8   :  { %s864_s16 = smov 0   ;;  %s866_s17 = smov 0  }
   0x9 LB: > { %s993_s18 = sadd.s32 4294967295, %s826_s17   ;;  %s40_s19 = sadd.s32 1, %s814_s14  ;;  %s826_s17 = sphi %s866_s17, %s19_s17   ;;  %s822_s16 = sphi %s864_s16, %s1008_s16   ;;  %s818_s15 = sphi %s862_s15, %s1007_s15   ;;  %s814_s14 = sphi %s860_s14, %s1006_s14   ;;  %s810_s13 = sphi %s858_s13, %s1005_s13   ;;  %s806_s12 = sphi %s856_s12, %s1004_s12  }
   0xa   : > { %p47_p0 = scmp.ne.s32.totalorder %s814_s14, %s810_s13  ;;  %p48_p1 = scmp.eq.s32.totalorder %s826_s17, 0 }
   0xb   : > { %p53_p2 = scmp.ne.s32.totalorder %s810_s13, %s806_s12  ;;  %p892_p3 = scmp.eq.s32.totalorder %s993_s18, 0 }
   0xc   : > { %p896_p4 = por %p48_p1, %p47_p0  ;;  %p548_p5 = scmp.ge.s32.totalorder %s826_s17, 1 }
   0xd   : > { %p903_p6 = por %p892_p3, %p53_p2  ;;  %p143_p7 = scmp.lt.s32.totalorder %s826_s17, 3 }
   0xe   : > { %s999_s2 = sld [smem:[#allocation12_spill]]  ;;  %s828_s27 = smov [#allocation7]  }
   0xf   : > { %p911_p8 = pnand %p548_p5, %p143_p7  ;;  %s157_s28 = sshll.u32 %s828_s27, 4  ;;  %s158_s28 = int_to_ptr.vmem [resolvable:$true] %s157_s28 }
  0x10   : > { %p620_p10 = scmp.lt.s32.totalorder %s826_s17, 2  ;;  %s31_s30 = sadd.s32 1, %s822_s16 }
  0x11   : > { %p608_p9 = pneg %p911_p8  ;;  %p33_p13 = scmp.ge.s32.totalorder %s31_s30, 2 }
  0x12   : > { %p922_p12 = pnand %p620_p10, %p896_p4  ;;  %s168_s4 = sand.u32 1, %s814_s14  }
  0x13   : > { %p609_p11 = pnand %p608_p9, %p892_p3  ;;  %s585_s5 = sshll.u32 %s822_s16, 4 }
  0x14   : > { %s155_s25 = sshll.u32 %s999_s2, 4  ;;  %s1010_s30 = smov (%p33_p13, %s31_s30), 0  ;;  %s156_s25 = int_to_ptr.hbm [resolvable:$true] %s155_s25 }
  0x15   : > { %611 = dma.hbm_to_vmem [thread:$0]  (!%p609_p11), %s156_s25, 64, %s158_s28, [#allocation6]  }
  0x16   : > { %s551_s6 = sshll.u32 %s168_s4, 3  ;;  %s35_s7 = ssub.s32 %s822_s16, %s1010_s30 }
  0x17   : > { %p38_p0 = scmp.eq.s32.totalorder %s35_s7, 0  ;;  %s1002_s0 = sld [smem:[#allocation11_spill]] }
  0x18   : > { %s172_s12 = scalar_lea.vmem [#allocation3], %s551_s6  ;;  %s169_s24 = scalar_lea.sflag [#allocation4], %s168_s4 }
  0x19   : > { %s181_s21 = sshll.u32 %s172_s12, 4  ;;  %s829_s25 = smov 128   ;;  %s182_s21 = int_to_ptr.vmem [resolvable:$true] %s181_s21 }
  0x1a   : > { %s939_s23 = scalar_select %p38_p0, %s814_s14, %s40_s19  }
  0x1b   : > { %s830_s27 = smov 64   ;;  %s831_s28 = smov 4  }
  0x1c   : > { %s470_s8 = scalar_lea.hbm %s990_s1, %s585_s5  ;;  %s195_s9 = scalar_lea.vmem [#allocation5], %s551_s6 }
  0x1d   : > { %s178_s10 = scalar_lea.hbm %s1002_s0, %s585_s5  ;;  %s471_s0 = scalar_lea.hbm %s470_s8, 4 }
  0x1e   : > { %s179_s11 = sshll.u32 %s178_s10, 4  ;;  %s205_s10 = sshll.u32 %s195_s9, 4  ;;  %s180_s11 = int_to_ptr.hbm [resolvable:$true] %s179_s11  ;;  %s206_s10 = int_to_ptr.vmem [resolvable:$true] %s205_s10 }
  0x1f   : > { %615 = dma.hbm_to_vmem [thread:$0]  (!%p922_p12), %s180_s11, 128, %s182_s21, %s169_s24, %s829_s25, %s830_s27, %s831_s28  }
  0x20   : > { %s203_s12 = sshll.u32 %s471_s0, 4  ;;  %s191_s19 = sand.u32 1, %s826_s17   ;;  %s204_s12 = int_to_ptr.hbm [resolvable:$true] %s203_s12 }
  0x21   : > { %s192_s2 = scalar_lea.sflag [#allocation6], %s191_s19  ;;  %217 = sbr.rel (%p911_p8) target bundleno = 450 (0x1c2), region = 32 }
  0x22   : > { %618 = dma.hbm_to_vmem [thread:$0]  (!%p922_p12), %s204_s12, 128, %s206_s10, %s192_s2, %s829_s25, %s830_s27, %s831_s28  }
  0x23   : > { %s219_s4 = sand.u32 (!%p911_p8), 1, %s810_s13  }
  0x24   : > { %s558_s11 = sshll.u32 (!%p911_p8), %s219_s4, 3  ;;  %s220_s21 = scalar_lea.sflag (!%p911_p8), [#allocation4], %s219_s4 }
  0x25   : > { %s223_s18 = scalar_lea.vmem (!%p911_p8), [#allocation3], %s558_s11 }
  0x26   : > { %793 = dma.done.wait (%p903_p6), %s220_s21, 128  }
  0x27   : > { %795 = vsyncadd (%p903_p6), %s220_s21, 4294967168  ;;  %s1003_s0 = sadd.s32 4294967295, %s826_s17   ;;  %s233_s2 = scalar_lea.vmem [#allocation5], %s558_s11 }
  0x28   : > { %s229_s5 = sand.u32 1, %s1003_s0  }
  0x29   : > { %s230_s29 = scalar_lea.sflag [#allocation6], %s229_s5 }
  0x2a   : > { %797 = dma.done.wait (%p903_p6), %s230_s29, 128  }
  0x2b   : > { %799 = vsyncadd (%p903_p6), %s230_s29, 4294967168 }
  0x2c   : > { %801 = dma.done.wait (%p892_p3), [#allocation6], 64  }
  0x2d   : > { %803 = vsyncadd (%p892_p3), [#allocation6], 4294967232  ;;  %v593_v0 = vld [vmem:[%s223_s18] sm:$0xff]   ;;  %v597_v1 = vld [vmem:[%s233_s2] sm:$0xff]   ;;  %s832_s26 = smov 125   ;;  %s833_s6 = smov 124   ;;  %v408_v40 = vlaneseq }
  0x2e   : > { %v594_v2 = vunpack.c.l.b16 %v593_v0  ;;  %v598_v3 = vunpack.c.l.b16 %v597_v1  ;;  %v595_v4 = vunpack.c.h.b16 %v593_v0  ;;  %v599_v8 = vunpack.c.h.b16 %v597_v1  ;;  %s834_s22 = smov 126   ;;  %s835_s20 = smov 127   ;;  %v350_v39 = vld [vmem:[#allocation7] sm:$0xf] }
  0x2f   : > { %vm317_vm0 = vcmask 1031168   ;;  %vm330_vm1 = vcmask 1022976   ;;  %vm343_vm2 = vcmask 1014784   ;;  %vm304_vm3 = vcmask 1039360   ;;  %p270_p1 = scmp.lt.s32.totalorder %s818_s15, 1 }
  0x30   : > { %v296_v5 = vpack.c.b16 %v598_v3, %v594_v2  ;;  %v290_v6 = vpack.c.b16 %v594_v2, %v594_v2  ;;  %v291_v7 = vpack.c.b16 %v595_v4, %v595_v4  ;;  %v297_v9 = vpack.c.b16 %v599_v8, %v595_v4 }
  0x31   : > { %vm391_vm4 = vcmask 654336   ;;  %v409_v41 = vand.u32 127, %v408_v40  ;;  %s1012_s15 = smov (!%p270_p1, %s818_s15), 1  ;;  %vm419_vm6 = vcmask 7168   ;;  %vm424_vm7 = vcmask 15368  }
  0x32   : > { %324 = vrot.lane.b32.xlu1 %v296_v5, %s832_s26  ;;  %294 = vst [vmem:[#allocation2] sm:$0xf] %v290_v6  ;;  %337 = vrot.lane.b32.xlu0 %v296_v5, %s833_s6  ;;  %s561_s24 = sshll.u32 %s1012_s15, 3 }
  0x33   : > { %295 = vst [vmem:[#allocation2 + $0x4] sm:$0xf] %v291_v7  ;;  %311 = vrot.lane.b32.xlu2 %v296_v5, %s834_s22  ;;  %vm413_vm5 = vcmp.lt.s32.totalorder %v409_v41, 16  ;;  %s276_s28 = scalar_lea.vmem %s992_s3, %s561_s24 }
  0x3a   : > { %326 = vrot.lane.b32.xlu1 %v297_v9, %s832_s26  ;;  %339 = vrot.lane.b32.xlu0 %v297_v9, %s833_s6  ;;  %v587_v38 = vld [vmem:[#allocation2] sm:$0xff] }
  0x3b   : > { %313 = vrot.lane.b32.xlu2 %v297_v9, %s834_s22 }
  0x42   : > { %300 = vrot.lane.b32.xlu1 %v297_v9, %s835_s20  ;;  %298 = vrot.lane.b32.xlu0 %v296_v5, %s835_s20 }
  0x8d   : > { %v312_v10 = vpop.permute.xlu2 %311 }
  0x8e   : > { %v315_v11 = vrot.slane %v312_v10, 4 }
  0x90   : > { %v318_v12 = vsel %vm317_vm0, %v312_v10, %v315_v11 }
  0x91   : > { %322 = vst [vmem:[#allocation2 + $0x10] sm:$0xf] %v318_v12 }
  0x95   : > { %v314_v13 = vpop.permute.xlu2 %313 }
  0x96   : > { %v316_v14 = vrot.slane %v314_v13, 4 }
  0x98   : > { %v319_v15 = vsel %vm317_vm0, %v314_v13, %v316_v14 }
  0x99   : > { %323 = vst [vmem:[#allocation2 + $0x14] sm:$0xf] %v319_v15 }
  0xa0   : > { %v589_v36 = vld [vmem:[#allocation2 + $0x10] sm:$0xff] }
  0xa4   : > { %v325_v16 = vpop.permute.xlu1 %324  ;;  %v338_v17 = vpop.permute.xlu0 %337 }
  0xa5   : > { %v328_v18 = vrot.slane %v325_v16, 4  ;;  %v341_v19 = vrot.slane %v338_v17, 4 }
  0xa7   : > { %v331_v20 = vsel %vm330_vm1, %v325_v16, %v328_v18  ;;  %v344_v21 = vsel %vm343_vm2, %v338_v17, %v341_v19 }
  0xa8   : > { %335 = vst [vmem:[#allocation2 + $0x18] sm:$0xf] %v331_v20 }
  0xa9   : > { %348 = vst [vmem:[#allocation2 + $0x20] sm:$0xf] %v344_v21 }
  0xac   : > { %v327_v22 = vpop.permute.xlu1 %326  ;;  %v340_v23 = vpop.permute.xlu0 %339 }
  0xad   : > { %v329_v24 = vrot.slane %v327_v22, 4  ;;  %v342_v25 = vrot.slane %v340_v23, 4 }
  0xaf   : > { %v332_v26 = vsel %vm330_vm1, %v327_v22, %v329_v24  ;;  %v345_v27 = vsel %vm343_vm2, %v340_v23, %v342_v25 }
  0xb0   : > { %336 = vst [vmem:[#allocation2 + $0x1c] sm:$0xf] %v332_v26 }
  0xb1   : > { %349 = vst [vmem:[#allocation2 + $0x24] sm:$0xf] %v345_v27 }
  0xb4   : > { %v301_v28 = vpop.permute.xlu1 %300  ;;  %v299_v29 = vpop.permute.xlu0 %298 }
  0xb5   : > { %v303_v30 = vrot.slane %v301_v28, 4  ;;  %v302_v31 = vrot.slane %v299_v29, 4 }
  0xb7   : > { %v306_v32 = vsel %vm304_vm3, %v301_v28, %v303_v30  ;;  %v305_v33 = vsel %vm304_vm3, %v299_v29, %v302_v31  ;;  %v590_v35 = vld [vmem:[#allocation2 + $0x18] sm:$0xff] }
  0xb8   : > { %310 = vst [vmem:[#allocation2 + $0xc] sm:$0xf] %v306_v32  ;;  %v591_v34 = vld [vmem:[#allocation2 + $0x20] sm:$0xff] }
  0xb9   : > { %309 = vst [vmem:[#allocation2 + $0x8] sm:$0xf] %v305_v33  ;;  %398 = vmatpush.bf16.msra.mxu0 %v591_v34 }
  0xbd   : > { %399 = vmatpush.bf16.msra.mxu0 %v590_v35 }
  0xc0   : > { %v588_v37 = vld [vmem:[#allocation2 + $0x8] sm:$0xff] }
  0xc1   : > { %400 = vmatpush.bf16.msra.mxu0 %v589_v36 }
  0xc5   : > { %401 = vmatpush.bf16.msra.mxu0 %v588_v37 }
  0xc9   : > { %402 = vmatpush.bf16.msra.mxu0 %v587_v38 }
  0xcc   : > { %582 = vmatmul.msk.bf16.vlgmr.msra.gmra.mxu0 %vm391_vm4, %v350_v39 }
 0x149   : > { %v404_v42 = vpop.f32.mrf.mxu0 }
 0x14a   : > { %v416_v43 = vsel %vm413_vm5, %v404_v42, 0.0 }
 0x14b   : > { %417 = vadd.xlane.f32.xlu2 %v416_v43  ;;  %v421_v44 = vmul.f32 %v416_v43, %v416_v43 }
 0x14d   : > { %422 = vadd.xlane.f32.xlu0 %v421_v44 }
 0x151   : > { %v406_v45 = vpop.f32.mrf.mxu0 }
 0x1be   : > { %v418_v46 = vpop.xlane.xlu2 %417 }
 0x1bf   : > { %420 = vst.msk [vmem:[%s276_s28] sm:$0xff] %vm419_vm6, %v418_v46 }
 0x1c0   : > { %v423_v47 = vpop.xlane.xlu0 %422 }
 0x1c1   : > { %425 = vst.msk [vmem:[%s276_s28] sm:$0xff] %vm424_vm7, %v423_v47 }
 0x1c2 PF: > { %s19_s17 = sadd.s32 1, %s826_s17   ;;  %s1004_s12 = smov %s810_s13 }
 0x1c3   : > { %p16_p2 = scmp.ge.s32.totalorder %s19_s17, 4   ;;  %s1005_s13 = smov %s814_s14 }
 0x1c4   : > { %s1006_s14 = smov %s939_s23  ;;  %s1007_s15 = smov %s822_s16 }
 0x1c5   : > { %s1008_s16 = smov %s1010_s30  ;;  %18 = sbr.rel (!%p16_p2) target bundleno = 9 (0x9), region = 89 }
 0x1ca   :  { %451 = vsyncpa [#allocation4], 1 }
 0x1cb   :  { %453 = vsyncpa [#allocation4 + $0x1], 1 }
 0x1cc   :  { %454 = vsyncpa [#allocation6], 1 }
 0x1cd   :  { %456 = vsyncpa [#allocation6 + $0x1], 1 }

// kernel: tpu_custom_call.1
= control target key start
LH: loop header
LB: loop body
LE: loop exit
PB: predicated region body
PF: predicated region fallthrough
CT: control target
= control target key end

     0   :  { %s989_s0 = inlined_call_operand.hbm [shape: bf16[2,16,256], index: 0, kind: input, shape index: {}]   ;;  %s990_s1 = inlined_call_operand.hbm [shape: bf16[2,16,256], index: 1, kind: input, shape index: {}]   ;;  %s991_s2 = inlined_call_operand.hbm [shape: bf16[8,80], index: 2, kind: input, shape index: {}]   ;;  %s992_s3 = inlined_call_operand.vmem [shape: f32[2,1,8,2], index: 3, kind: output, shape index: {}]  }
   0x1   :  { %994 = sst [smem:[#allocation11_spill]] %s989_s0 }
   0x2   :  { %995 = sst [smem:[#allocation12_spill]] %s991_s2 }
   0x3   :  { %8 = vsyncpa [#allocation4], 0 }
   0x4   :  { %10 = vsyncpa [#allocation4 + $0x1], 0 }
   0x5   :  { %11 = vsyncpa [#allocation6], 0 }
   0x6   :  { %13 = vsyncpa [#allocation6 + $0x1], 0  ;;  %s856_s12 = smov 0   ;;  %s858_s13 = smov 0  }
   0x7   :  { %s860_s14 = smov 0   ;;  %s862_s15 = smov 0  }
   0x8   :  { %s864_s16 = smov 0   ;;  %s866_s17 = smov 0  }
   0x9 LB: > { %s993_s18 = sadd.s32 4294967295, %s826_s17   ;;  %s40_s19 = sadd.s32 1, %s814_s14  ;;  %s826_s17 = sphi %s866_s17, %s19_s17   ;;  %s822_s16 = sphi %s864_s16, %s1008_s16   ;;  %s818_s15 = sphi %s862_s15, %s1007_s15   ;;  %s814_s14 = sphi %s860_s14, %s1006_s14   ;;  %s810_s13 = sphi %s858_s13, %s1005_s13   ;;  %s806_s12 = sphi %s856_s12, %s1004_s12  }
   0xa   : > { %p47_p0 = scmp.ne.s32.totalorder %s814_s14, %s810_s13  ;;  %p48_p1 = scmp.eq.s32.totalorder %s826_s17, 0 }
   0xb   : > { %p53_p2 = scmp.ne.s32.totalorder %s810_s13, %s806_s12  ;;  %p892_p3 = scmp.eq.s32.totalorder %s993_s18, 0 }
   0xc   : > { %p896_p4 = por %p48_p1, %p47_p0  ;;  %p548_p5 = scmp.ge.s32.totalorder %s826_s17, 1 }
   0xd   : > { %p903_p6 = por %p892_p3, %p53_p2  ;;  %p143_p7 = scmp.lt.s32.totalorder %s826_s17, 3 }
   0xe   : > { %s999_s2 = sld [smem:[#allocation12_spill]]  ;;  %s828_s27 = smov [#allocation7]  }
   0xf   : > { %p911_p8 = pnand %p548_p5, %p143_p7  ;;  %s157_s28 = sshll.u32 %s828_s27, 4  ;;  %s158_s28 = int_to_ptr.vmem [resolvable:$true] %s157_s28 }
  0x10   : > { %p620_p10 = scmp.lt.s32.totalorder %s826_s17, 2  ;;  %s31_s30 = sadd.s32 1, %s822_s16 }
  0x11   : > { %p608_p9 = pneg %p911_p8  ;;  %p33_p13 = scmp.ge.s32.totalorder %s31_s30, 2 }
  0x12   : > { %p922_p12 = pnand %p620_p10, %p896_p4  ;;  %s168_s4 = sand.u32 1, %s814_s14  }
  0x13   : > { %p609_p11 = pnand %p608_p9, %p892_p3  ;;  %s585_s5 = sshll.u32 %s822_s16, 4 }
  0x14   : > { %s155_s25 = sshll.u32 %s999_s2, 4  ;;  %s1010_s30 = smov (%p33_p13, %s31_s30), 0  ;;  %s156_s25 = int_to_ptr.hbm [resolvable:$true] %s155_s25 }
  0x15   : > { %611 = dma.hbm_to_vmem [thread:$0]  (!%p609_p11), %s156_s25, 64, %s158_s28, [#allocation6]  }
  0x16   : > { %s551_s6 = sshll.u32 %s168_s4, 3  ;;  %s35_s7 = ssub.s32 %s822_s16, %s1010_s30 }
  0x17   : > { %p38_p0 = scmp.eq.s32.totalorder %s35_s7, 0  ;;  %s1002_s0 = sld [smem:[#allocation11_spill]] }
  0x18   : > { %s172_s12 = scalar_lea.vmem [#allocation3], %s551_s6  ;;  %s169_s24 = scalar_lea.sflag [#allocation4], %s168_s4 }
  0x19   : > { %s181_s21 = sshll.u32 %s172_s12, 4  ;;  %s829_s25 = smov 128   ;;  %s182_s21 = int_to_ptr.vmem [resolvable:$true] %s181_s21 }
  0x1a   : > { %s939_s23 = scalar_select %p38_p0, %s814_s14, %s40_s19  }
  0x1b   : > { %s830_s27 = smov 64   ;;  %s831_s28 = smov 4  }
  0x1c   : > { %s470_s8 = scalar_lea.hbm %s990_s1, %s585_s5  ;;  %s195_s9 = scalar_lea.vmem [#allocation5], %s551_s6 }
  0x1d   : > { %s178_s10 = scalar_lea.hbm %s1002_s0, %s585_s5  ;;  %s471_s0 = scalar_lea.hbm %s470_s8, 4 }
  0x1e   : > { %s179_s11 = sshll.u32 %s178_s10, 4  ;;  %s205_s10 = sshll.u32 %s195_s9, 4  ;;  %s180_s11 = int_to_ptr.hbm [resolvable:$true] %s179_s11  ;;  %s206_s10 = int_to_ptr.vmem [resolvable:$true] %s205_s10 }
  0x1f   : > { %615 = dma.hbm_to_vmem [thread:$0]  (!%p922_p12), %s180_s11, 128, %s182_s21, %s169_s24, %s829_s25, %s830_s27, %s831_s28  }
  0x20   : > { %s203_s12 = sshll.u32 %s471_s0, 4  ;;  %s191_s19 = sand.u32 1, %s826_s17   ;;  %s204_s12 = int_to_ptr.hbm [resolvable:$true] %s203_s12 }
  0x21   : > { %s192_s2 = scalar_lea.sflag [#allocation6], %s191_s19  ;;  %217 = sbr.rel (%p911_p8) target bundleno = 450 (0x1c2), region = 32 }
  0x22   : > { %618 = dma.hbm_to_vmem [thread:$0]  (!%p922_p12), %s204_s12, 128, %s206_s10, %s192_s2, %s829_s25, %s830_s27, %s831_s28  }
  0x23   : > { %s219_s4 = sand.u32 (!%p911_p8), 1, %s810_s13  }
  0x24   : > { %s558_s11 = sshll.u32 (!%p911_p8), %s219_s4, 3  ;;  %s220_s21 = scalar_lea.sflag (!%p911_p8), [#allocation4], %s219_s4 }
  0x25   : > { %s223_s18 = scalar_lea.vmem (!%p911_p8), [#allocation3], %s558_s11 }
  0x26   : > { %793 = dma.done.wait (%p903_p6), %s220_s21, 128  }
  0x27   : > { %795 = vsyncadd (%p903_p6), %s220_s21, 4294967168  ;;  %s1003_s0 = sadd.s32 4294967295, %s826_s17   ;;  %s233_s2 = scalar_lea.vmem [#allocation5], %s558_s11 }
  0x28   : > { %s229_s5 = sand.u32 1, %s1003_s0  }
  0x29   : > { %s230_s29 = scalar_lea.sflag [#allocation6], %s229_s5 }
  0x2a   : > { %797 = dma.done.wait (%p903_p6), %s230_s29, 128  }
  0x2b   : > { %799 = vsyncadd (%p903_p6), %s230_s29, 4294967168 }
  0x2c   : > { %801 = dma.done.wait (%p892_p3), [#allocation6], 64  }
  0x2d   : > { %803 = vsyncadd (%p892_p3), [#allocation6], 4294967232  ;;  %v593_v0 = vld [vmem:[%s223_s18] sm:$0xff]   ;;  %v597_v1 = vld [vmem:[%s233_s2] sm:$0xff]   ;;  %s832_s26 = smov 125   ;;  %s833_s6 = smov 124   ;;  %v408_v40 = vlaneseq }
  0x2e   : > { %v594_v2 = vunpack.c.l.b16 %v593_v0  ;;  %v598_v3 = vunpack.c.l.b16 %v597_v1  ;;  %v595_v4 = vunpack.c.h.b16 %v593_v0  ;;  %v599_v8 = vunpack.c.h.b16 %v597_v1  ;;  %s834_s22 = smov 126   ;;  %s835_s20 = smov 127   ;;  %v350_v39 = vld [vmem:[#allocation7] sm:$0xf] }
  0x2f   : > { %vm317_vm0 = vcmask 1031168   ;;  %vm330_vm1 = vcmask 1022976   ;;  %vm343_vm2 = vcmask 1014784   ;;  %vm304_vm3 = vcmask 1039360   ;;  %p270_p1 = scmp.lt.s32.totalorder %s818_s15, 1 }
  0x30   : > { %v296_v5 = vpack.c.b16 %v598_v3, %v594_v2  ;;  %v290_v6 = vpack.c.b16 %v594_v2, %v594_v2  ;;  %v291_v7 = vpack.c.b16 %v595_v4, %v595_v4  ;;  %v297_v9 = vpack.c.b16 %v599_v8, %v595_v4 }
  0x31   : > { %vm391_vm4 = vcmask 654336   ;;  %v409_v41 = vand.u32 127, %v408_v40  ;;  %s1012_s15 = smov (!%p270_p1, %s818_s15), 1  ;;  %vm419_vm6 = vcmask 7168   ;;  %vm424_vm7 = vcmask 15368  }
  0x32   : > { %324 = vrot.lane.b32.xlu1 %v296_v5, %s832_s26  ;;  %294 = vst [vmem:[#allocation2] sm:$0xf] %v290_v6  ;;  %337 = vrot.lane.b32.xlu0 %v296_v5, %s833_s6  ;;  %s561_s24 = sshll.u32 %s1012_s15, 3 }
  0x33   : > { %295 = vst [vmem:[#allocation2 + $0x4] sm:$0xf] %v291_v7  ;;  %311 = vrot.lane.b32.xlu2 %v296_v5, %s834_s22  ;;  %vm413_vm5 = vcmp.lt.s32.totalorder %v409_v41, 16  ;;  %s276_s28 = scalar_lea.vmem %s992_s3, %s561_s24 }
  0x3a   : > { %326 = vrot.lane.b32.xlu1 %v297_v9, %s832_s26  ;;  %339 = vrot.lane.b32.xlu0 %v297_v9, %s833_s6  ;;  %v587_v38 = vld [vmem:[#allocation2] sm:$0xff] }
  0x3b   : > { %313 = vrot.lane.b32.xlu2 %v297_v9, %s834_s22 }
  0x42   : > { %300 = vrot.lane.b32.xlu1 %v297_v9, %s835_s20  ;;  %298 = vrot.lane.b32.xlu0 %v296_v5, %s835_s20 }
  0x8d   : > { %v312_v10 = vpop.permute.xlu2 %311 }
  0x8e   : > { %v315_v11 = vrot.slane %v312_v10, 4 }
  0x90   : > { %v318_v12 = vsel %vm317_vm0, %v312_v10, %v315_v11 }
  0x91   : > { %322 = vst [vmem:[#allocation2 + $0x10] sm:$0xf] %v318_v12 }
  0x95   : > { %v314_v13 = vpop.permute.xlu2 %313 }
  0x96   : > { %v316_v14 = vrot.slane %v314_v13, 4 }
  0x98   : > { %v319_v15 = vsel %vm317_vm0, %v314_v13, %v316_v14 }
  0x99   : > { %323 = vst [vmem:[#allocation2 + $0x14] sm:$0xf] %v319_v15 }
  0xa0   : > { %v589_v36 = vld [vmem:[#allocation2 + $0x10] sm:$0xff] }
  0xa4   : > { %v325_v16 = vpop.permute.xlu1 %324  ;;  %v338_v17 = vpop.permute.xlu0 %337 }
  0xa5   : > { %v328_v18 = vrot.slane %v325_v16, 4  ;;  %v341_v19 = vrot.slane %v338_v17, 4 }
  0xa7   : > { %v331_v20 = vsel %vm330_vm1, %v325_v16, %v328_v18  ;;  %v344_v21 = vsel %vm343_vm2, %v338_v17, %v341_v19 }
  0xa8   : > { %335 = vst [vmem:[#allocation2 + $0x18] sm:$0xf] %v331_v20 }
  0xa9   : > { %348 = vst [vmem:[#allocation2 + $0x20] sm:$0xf] %v344_v21 }
  0xac   : > { %v327_v22 = vpop.permute.xlu1 %326  ;;  %v340_v23 = vpop.permute.xlu0 %339 }
  0xad   : > { %v329_v24 = vrot.slane %v327_v22, 4  ;;  %v342_v25 = vrot.slane %v340_v23, 4 }
  0xaf   : > { %v332_v26 = vsel %vm330_vm1, %v327_v22, %v329_v24  ;;  %v345_v27 = vsel %vm343_vm2, %v340_v23, %v342_v25 }
  0xb0   : > { %336 = vst [vmem:[#allocation2 + $0x1c] sm:$0xf] %v332_v26 }
  0xb1   : > { %349 = vst [vmem:[#allocation2 + $0x24] sm:$0xf] %v345_v27 }
  0xb4   : > { %v301_v28 = vpop.permute.xlu1 %300  ;;  %v299_v29 = vpop.permute.xlu0 %298 }
  0xb5   : > { %v303_v30 = vrot.slane %v301_v28, 4  ;;  %v302_v31 = vrot.slane %v299_v29, 4 }
  0xb7   : > { %v306_v32 = vsel %vm304_vm3, %v301_v28, %v303_v30  ;;  %v305_v33 = vsel %vm304_vm3, %v299_v29, %v302_v31  ;;  %v590_v35 = vld [vmem:[#allocation2 + $0x18] sm:$0xff] }
  0xb8   : > { %310 = vst [vmem:[#allocation2 + $0xc] sm:$0xf] %v306_v32  ;;  %v591_v34 = vld [vmem:[#allocation2 + $0x20] sm:$0xff] }
  0xb9   : > { %309 = vst [vmem:[#allocation2 + $0x8] sm:$0xf] %v305_v33  ;;  %398 = vmatpush.bf16.msra.mxu0 %v591_v34 }
  0xbd   : > { %399 = vmatpush.bf16.msra.mxu0 %v590_v35 }
  0xc0   : > { %v588_v37 = vld [vmem:[#allocation2 + $0x8] sm:$0xff] }
  0xc1   : > { %400 = vmatpush.bf16.msra.mxu0 %v589_v36 }
  0xc5   : > { %401 = vmatpush.bf16.msra.mxu0 %v588_v37 }
  0xc9   : > { %402 = vmatpush.bf16.msra.mxu0 %v587_v38 }
  0xcc   : > { %582 = vmatmul.msk.bf16.vlgmr.msra.gmra.mxu0 %vm391_vm4, %v350_v39 }
 0x149   : > { %v404_v42 = vpop.f32.mrf.mxu0 }
 0x14a   : > { %v416_v43 = vsel %vm413_vm5, %v404_v42, 0.0 }
 0x14b   : > { %417 = vadd.xlane.f32.xlu2 %v416_v43  ;;  %v421_v44 = vmul.f32 %v416_v43, %v416_v43 }
 0x14d   : > { %422 = vadd.xlane.f32.xlu0 %v421_v44 }
 0x151   : > { %v406_v45 = vpop.f32.mrf.mxu0 }
 0x1be   : > { %v418_v46 = vpop.xlane.xlu2 %417 }
 0x1bf   : > { %420 = vst.msk [vmem:[%s276_s28] sm:$0xff] %vm419_vm6, %v418_v46 }
 0x1c0   : > { %v423_v47 = vpop.xlane.xlu0 %422 }
 0x1c1   : > { %425 = vst.msk [vmem:[%s276_s28] sm:$0xff] %vm424_vm7, %v423_v47 }
 0x1c2 PF: > { %s19_s17 = sadd.s32 1, %s826_s17   ;;  %s1004_s12 = smov %s810_s13 }
 0x1c3   : > { %p16_p2 = scmp.ge.s32.totalorder %s19_s17, 4   ;;  %s1005_s13 = smov %s814_s14 }
 0x1c4   : > { %s1006_s14 = smov %s939_s23  ;;  %s1007_s15 = smov %s822_s16 }
 0x1c5   : > { %s1008_s16 = smov %s1010_s30  ;;  %18 = sbr.rel (!%p16_p2) target bundleno = 9 (0x9), region = 89 }
 0x1ca   :  { %451 = vsyncpa [#allocation4], 1 }
 0x1cb   :  { %453 = vsyncpa [#allocation4 + $0x1], 1 }
 0x1cc   :  { %454 = vsyncpa [#allocation6], 1 }
 0x1cd   :  { %456 = vsyncpa [#allocation6 + $0x1], 1 }

</bundles_post_ra>
